<compile_context>
chip_gen: v7x
topology: tpu7x:2x2x1
jax: 0.10.0
libtpu: 0.0.40
codegen_flags: <defaults>
</compile_context>

<pallas_src>
import functools

import jax
import jax.numpy as jnp
from jax.experimental import pallas as pl
from jax.experimental.pallas import tpu as pltpu


def _actor_kernel(xT_ref, p_ref, muT_ref, *, S, H, A):
    """One batch-block of the Actor forward pass, in [feature, batch] layout.

    xT_ref : [S, Bblk]             states, transposed (batch on lanes)
    p_ref  : [2H + ceil8(A), H]    packed params:
             rows [0:H),  cols [0:S)    -> W1^T   ([H, S], torch [out, in])
             rows [0:H),  col  S        -> b1
             rows [0:H),  col  S+1      -> b2
             rows [0:A),  col  S+2      -> b3
             rows [H:2H)                -> W2^T   ([H, H], torch [out, in])
             rows [2H:2H+ceil8(A))      -> W3^T   ([A, H], zero-padded to 8 rows)
    muT_ref: [A, Bblk]
    """
    xT = xT_ref[...]                                         # [S, B]

    # ---- Layer 1: K = S (tiny) -> broadcast-MACs on the VPU, bias folded in.
    h = p_ref[0:H, S:S + 1]                                  # b1, [H, 1]
    for s in range(S):                                       # S is small & static
        h = h + p_ref[0:H, s:s + 1] * xT[s:s + 1, :]         # [H,1]*[1,B] -> [H,B]
    h = jnp.maximum(h, 0.0)

    # ---- Layer 2: the only real matmul (H x H) -> MXU. W2^T starts on an
    #      8-row-aligned slab boundary, so the slice is a free view.
    h = jnp.dot(p_ref[H:2 * H, :], h, preferred_element_type=jnp.float32)
    h = jnp.maximum(h + p_ref[0:H, S + 1:S + 2], 0.0)        # + b2 [H,1]

    # ---- Head: one small MXU dot; slab rows are padded to a full sublane tile,
    #      the padded rows are zeros so slicing [0:A] afterwards is exact.
    ap = ((A + 7) // 8) * 8
    mu = jnp.dot(p_ref[2 * H:2 * H + ap, :], h,
                 preferred_element_type=jnp.float32)[0:A, :]  # [A, B]
    mu = mu + p_ref[0:A, S + 2:S + 3]                         # + b3 [A,1]
    muT_ref[...] = mu.astype(muT_ref.dtype)


def pack_actor_params(w1, b1, w2, b2, w3, b3, log_std):
    """Pack all params into one 8-row-aligned [2H + ceil8(A), H] f32 slab + precomputed std.

    Expects weights stored [in, out]: w1 [S,H], b1 [H], w2 [H,H], b2 [H], w3 [H,A],
    b3 [A], log_std [A].
    """
    S, H = w1.shape
    A = w3.shape[1]
    assert H % 8 == 0 and S + 3 <= H and A <= H
    ap = ((A + 7) // 8) * 8

    # Segment 0 (rows 0..H-1): W1^T in cols [0:S), biases stored as columns.
    seg0 = jnp.zeros((H, H), jnp.float32)
    seg0 = seg0.at[:, :S].set(w1.T.astype(jnp.float32))
    seg0 = seg0.at[:, S].set(b1.reshape(H).astype(jnp.float32))
    seg0 = seg0.at[:, S + 1].set(b2.reshape(H).astype(jnp.float32))
    seg0 = seg0.at[:A, S + 2].set(b3.reshape(A).astype(jnp.float32))
    # Segment 1 (rows H..2H-1): W2^T (torch [out, in] layout).
    seg1 = w2.T.astype(jnp.float32)
    # Segment 2 (rows 2H..2H+ap-1): W3^T padded to a full 8-row sublane tile.
    seg2 = jnp.zeros((ap, H), jnp.float32).at[:A, :].set(w3.T.astype(jnp.float32))

    slab = jnp.concatenate([seg0, seg1, seg2], axis=0)        # [2H + ap, H]
    std = jnp.exp(log_std).reshape(1, A).astype(jnp.float32)  # hoisted out of the kernel
    return slab, std, (S, H, A)


def actor_forward(x, packed, *, max_block_rows=16384):
    """Returns (mu, std); equivalent to torch Normal(mu, std) of the Actor."""
    slab, std, (S, H, A) = packed
    B = x.shape[0]

    # Lane-dense batch block: multiple of 128, >= 2 grid steps when B is large enough
    # (so the "parallel" axis can use both v7x TensorCores), capped for VMEM headroom.
    block = min(max(pl.next_power_of_2(pl.cdiv(max(B, 1), 2)), 128), max_block_rows)
    Bp = pl.cdiv(B, block) * block
    grid = (Bp // block,)

    xT = x.T.astype(jnp.float32)                              # [S, B] -- cheap XLA transpose
    if Bp != B:
        xT = jnp.pad(xT, ((0, 0), (0, Bp - B)))

    kernel = functools.partial(_actor_kernel, S=S, H=H, A=A)
    cost = pl.CostEstimate(
        flops=2 * Bp * (S * H + H * H + H * A),
        transcendentals=0,
        bytes_accessed=S * Bp * 4 + slab.size * 4 + A * Bp * 4,
    )

    muT = pl.pallas_call(
        kernel,
        out_shape=jax.ShapeDtypeStruct((A, Bp), jnp.float32),
        grid=grid,
        in_specs=[
            # x^T streams over the batch (lane) axis.
            pl.BlockSpec((S, block), lambda i: (0, i)),
            # Packed params stay VMEM-resident across all grid iterations.
            pl.BlockSpec(slab.shape, lambda i: (0, 0)),
        ],
        out_specs=pl.BlockSpec((A, block), lambda i: (0, i)),
        compiler_params=pltpu.CompilerParams(
            dimension_semantics=("parallel",),    # lets v7x shard the batch over both TCs
        ),
        cost_estimate=cost,
    )(xT, slab)

    mu = muT[:, :B].T                             # [B, A]
    std_full = jnp.broadcast_to(std, (B, A))      # cheap XLA broadcast, not in the kernel
    return mu, std_full


def init_actor_params(key, state_dim, action_dim, hidden_dim):
    """Deterministic init mimicking PyTorch nn.Linear default (U[-1/sqrt(fan_in), ...]).
    Weights stored as [in, out]."""
    def linear(key, fan_in, fan_out):
        kw, kb = jax.random.split(key)
        bound = 1.0 / jnp.sqrt(float(fan_in))
        w = jax.random.uniform(kw, (fan_in, fan_out), jnp.float32, -bound, bound)
        b = jax.random.uniform(kb, (fan_out,), jnp.float32, -bound, bound)
        return w, b

    k1, k2, k3 = jax.random.split(key, 3)
    w1, b1 = linear(k1, state_dim, hidden_dim)
    w2, b2 = linear(k2, hidden_dim, hidden_dim)
    w3, b3 = linear(k3, hidden_dim, action_dim)
    log_std = jnp.zeros((action_dim,), jnp.float32)  # nn.Parameter(torch.zeros(action_dim))
    return (w1, b1, w2, b2, w3, b3, log_std)


def actor_ref(x, params):
    """Pure-JAX reference for correctness checking."""
    w1, b1, w2, b2, w3, b3, log_std = params
    h = jnp.maximum(x @ w1 + b1, 0.0)
    h = jnp.maximum(h @ w2 + b2, 0.0)
    mu = h @ w3 + b3
    std = jnp.broadcast_to(jnp.exp(log_std), mu.shape)
    return mu, std


if __name__ == "__main__":
    # VanDeVusseEnv: observation_space -> state_dim = 2, action_space -> action_dim = 1
    state_dim, action_dim, hidden_dim = 2, 1, 32
    batch = 8  # a small trajectory of states

    key = jax.random.PRNGKey(0)
    kx, kp = jax.random.split(key)
    # States in [0, 10] like the env's observation box.
    x = jax.random.uniform(kx, (batch, state_dim), jnp.float32, 0.0, 10.0)
    params = init_actor_params(kp, state_dim, action_dim, hidden_dim)
    packed = pack_actor_params(*params)

    mu, std = actor_forward(x, packed)
    mu, std = jax.block_until_ready(mu), jax.block_until_ready(std)

    mu_ref, std_ref = actor_ref(x, params)
    assert mu.shape == (batch, action_dim) and std.shape == (batch, action_dim)
    assert jnp.allclose(mu, mu_ref, atol=1e-5, rtol=1e-5)
    assert jnp.allclose(std, std_ref, atol=1e-6, rtol=1e-6)

    # TODO(synk): torch.distributions.Normal object itself has no Pallas equivalent;
    # (mu, std) fully parameterize it, and sampling/log_prob stay in plain JAX.

    print("KERNEL_OK")
</pallas_src>

<mosaic_0001>
module attributes {stable_mosaic.version = 11 : i64} {
  func.func @_actor_kernel(%arg0: i32, %arg1: memref<2x128xf32, #tpu.memory_space<vmem>>, %arg2: memref<72x32xf32, #tpu.memory_space<vmem>>, %arg3: memref<1x128xf32, #tpu.memory_space<vmem>>) attributes {dimension_semantics = [#tpu.dimension_semantics<parallel>], iteration_bounds = array<i64: 1>, scalar_prefetch = 0 : i64, scratch_operands = 0 : i64, tpu.core_type = #tpu.core_type<tc>, window_params = [{transform_indices = @transform_0, window_bounds = array<i64: 2, 128>}, {pipeline_mode = #tpu.pipeline_mode<synchronous>, transform_indices = @transform_1, window_bounds = array<i64: 72, 32>}, {transform_indices = @transform_2, window_bounds = array<i64: 1, 128>}]} {
    %c0 = arith.constant 0 : index
    %c0_0 = arith.constant 0 : index
    %0 = vector.load %arg1[%c0, %c0_0] : memref<2x128xf32, #tpu.memory_space<vmem>>, vector<2x128xf32>
    %c0_1 = arith.constant 0 : index
    %c2 = arith.constant 2 : index
    %1 = vector.load %arg2[%c0_1, %c2] : memref<72x32xf32, #tpu.memory_space<vmem>>, vector<32x1xf32>
    %c0_2 = arith.constant 0 : index
    %c0_3 = arith.constant 0 : index
    %2 = vector.load %arg2[%c0_2, %c0_3] : memref<72x32xf32, #tpu.memory_space<vmem>>, vector<32x1xf32>
    %3 = vector.extract_strided_slice %0 {offsets = [0, 0], sizes = [1, 128], strides = [1, 1]} : vector<2x128xf32> to vector<1x128xf32>
    %4 = vector.broadcast %2 : vector<32x1xf32> to vector<32x128xf32>
    %5 = vector.broadcast %3 : vector<1x128xf32> to vector<32x128xf32>
    %6 = arith.mulf %4, %5 : vector<32x128xf32>
    %7 = vector.broadcast %1 : vector<32x1xf32> to vector<32x128xf32>
    %8 = arith.addf %7, %6 : vector<32x128xf32>
    %c0_4 = arith.constant 0 : index
    %c1 = arith.constant 1 : index
    %9 = vector.load %arg2[%c0_4, %c1] : memref<72x32xf32, #tpu.memory_space<vmem>>, vector<32x1xf32>
    %10 = vector.extract_strided_slice %0 {offsets = [1, 0], sizes = [1, 128], strides = [1, 1]} : vector<2x128xf32> to vector<1x128xf32>
    %11 = vector.broadcast %9 : vector<32x1xf32> to vector<32x128xf32>
    %12 = vector.broadcast %10 : vector<1x128xf32> to vector<32x128xf32>
    %13 = arith.mulf %11, %12 : vector<32x128xf32>
    %14 = arith.addf %8, %13 : vector<32x128xf32>
    %cst = arith.constant 0.000000e+00 : f32
    %15 = vector.broadcast %cst : f32 to vector<32x128xf32>
    %16 = arith.maximumf %14, %15 : vector<32x128xf32>
    %c32 = arith.constant 32 : index
    %c0_5 = arith.constant 0 : index
    %17 = vector.load %arg2[%c32, %c0_5] : memref<72x32xf32, #tpu.memory_space<vmem>>, vector<32x32xf32>
    %cst_6 = arith.constant dense<0.000000e+00> : vector<32x128xf32>
    %18 = tpu.matmul %17, %16, %cst_6 {dimension_numbers = #tpu.dot_dimension_numbers<[1], [0], [0], [1], [0, 0, 1, 1], [], []>} : vector<32x32xf32>, vector<32x128xf32>, vector<32x128xf32> -> vector<32x128xf32>
    %c0_7 = arith.constant 0 : index
    %c3 = arith.constant 3 : index
    %19 = vector.load %arg2[%c0_7, %c3] : memref<72x32xf32, #tpu.memory_space<vmem>>, vector<32x1xf32>
    %20 = vector.broadcast %19 : vector<32x1xf32> to vector<32x128xf32>
    %21 = arith.addf %18, %20 : vector<32x128xf32>
    %cst_8 = arith.constant 0.000000e+00 : f32
    %22 = vector.broadcast %cst_8 : f32 to vector<32x128xf32>
    %23 = arith.maximumf %21, %22 : vector<32x128xf32>
    %c64 = arith.constant 64 : index
    %c0_9 = arith.constant 0 : index
    %24 = vector.load %arg2[%c64, %c0_9] : memref<72x32xf32, #tpu.memory_space<vmem>>, vector<8x32xf32>
    %cst_10 = arith.constant dense<0.000000e+00> : vector<8x128xf32>
    %25 = tpu.matmul %24, %23, %cst_10 {dimension_numbers = #tpu.dot_dimension_numbers<[1], [0], [0], [1], [0, 0, 1, 1], [], []>} : vector<8x32xf32>, vector<32x128xf32>, vector<8x128xf32> -> vector<8x128xf32>
    %26 = vector.extract_strided_slice %25 {offsets = [0, 0], sizes = [1, 128], strides = [1, 1]} : vector<8x128xf32> to vector<1x128xf32>
    %c0_11 = arith.constant 0 : index
    %c4 = arith.constant 4 : index
    %27 = vector.load %arg2[%c0_11, %c4] : memref<72x32xf32, #tpu.memory_space<vmem>>, vector<1x1xf32>
    %28 = vector.broadcast %27 : vector<1x1xf32> to vector<1x128xf32>
    %29 = arith.addf %26, %28 : vector<1x128xf32>
    %c0_12 = arith.constant 0 : index
    %c0_13 = arith.constant 0 : index
    %30 = vector.load %arg3[%c0_12, %c0_13] : memref<1x128xf32, #tpu.memory_space<vmem>>, vector<1x128xf32>
    tpu.vector_store %arg3[%c0_12, %c0_13], %29 {strides = array<i32>} : memref<1x128xf32, #tpu.memory_space<vmem>>, vector<1x128xf32>,
    return
  }
  func.func @transform_0(%arg0: i32) -> (i32, i32) {
    %c0_i32 = arith.constant 0 : i32
    %c0_i32_0 = arith.constant 0 : i32
    return %c0_i32, %arg0 : i32, i32
  }
  func.func @transform_1(%arg0: i32) -> (i32, i32) {
    %c0_i32 = arith.constant 0 : i32
    %c0_i32_0 = arith.constant 0 : i32
    %c0_i32_1 = arith.constant 0 : i32
    return %c0_i32, %c0_i32_0 : i32, i32
  }
  func.func @transform_2(%arg0: i32) -> (i32, i32) {
    %c0_i32 = arith.constant 0 : i32
    %c0_i32_0 = arith.constant 0 : i32
    return %c0_i32, %arg0 : i32, i32
  }
}

</mosaic_0001>

<bundles_post_ra>
// kernel: tpu_custom_call.1
= control target key start
LH: loop header
LB: loop body
LE: loop exit
PB: predicated region body
PF: predicated region fallthrough
CT: control target
= control target key end

     0   :  { %v415_v1 = vmov 2   ;;  %v416_v2 = vmov 0   ;;  %s489_s0 = inlined_call_operand.vmem [shape: f32[2,128], index: 0, kind: input, shape index: {}]   ;;  %s490_s1 = inlined_call_operand.vmem [shape: f32[72,32], index: 1, kind: input, shape index: {}]   ;;  %s491_s2 = inlined_call_operand.hbm [shape: f32[1,128], index: 2, kind: output, shape index: {}]  }
   0x1   :  { %v13_v0 = vld [vmem:[%s490_s1] sm:$0xff]  ;;  %382 = vset.pattern.permute.xlu1 %v415_v1  ;;  %381 = vset.pattern.permute.xlu0 %v416_v2 }
   0x2   :  { %7 = vsyncpa [#allocation3], 0  ;;  %46 = vperm.xlu1 %382, %v13_v0   ;;  %19 = vperm.xlu0 %381, %v13_v0   ;;  %v14_v3 = vld [vmem:[%s490_s1 + $0x8] sm:$0xff]  ;;  %v16_v4 = vld [vmem:[%s490_s1 + $0x18] sm:$0xff]  ;;  %v417_v5 = vmov 1   ;;  %vm117_vm0 = vcmask 261120   ;;  %v37_v9 = vlaneseq }
   0x3   :  { %v15_v6 = vld [vmem:[%s490_s1 + $0x10] sm:$0xff]  ;;  %v97_v7 = vld [vmem:[%s490_s1 + $0x20] sm:$0xff]  ;;  %v418_v8 = vmov 3   ;;  %v98_v50 = vld [vmem:[%s490_s1 + $0x28] sm:$0xff]  ;;  %v419_v53 = vmov 0.0|0.0   ;;  %vm420_vm1 = vmmov 0  }
   0x4   :  { %341 = vmatprep.mubr.msk.f32.mxu0 %vm117_vm0, %v97_v7  ;;  %v38_v10 = vshrl.u32 %v37_v9, 7  ;;  %v12_v15 = vld [vmem:[%s489_s0] sm:$0x3]  ;;  %v99_v51 = vld [vmem:[%s490_s1 + $0x30] sm:$0xff]  ;;  %v100_v52 = vld [vmem:[%s490_s1 + $0x38] sm:$0xff]  ;;  %366 = vmatprep.subr.bf16.mxu1 %v419_v53  ;;  %v421_v54 = vmov 0.0  }
   0x5   :  { %355 = vmatprep.mubr.msk.f32.mxu1 %vm420_vm1, %v421_v54  ;;  %v293_v55 = vld [vmem:[%s490_s1] sm:$0x1]  ;;  %v422_v56 = vmov 4   ;;  %s423_s30 = smov [#allocation2]  }
   0x6   :  { %50 = vperm.xlu1 %382, %v14_v3   ;;  %24 = vperm.xlu0 %381, %v14_v3   ;;  %v39_v13 = vsub.s32 0, %v38_v10  ;;  %v83_v14 = vsub.s32 1, %v38_v10  ;;  %s307_s3 = sshll.u32 %s423_s30, 4  ;;  %s308_s3 = int_to_ptr.vmem [resolvable:$true] %s307_s3 }
   0x7   :  { %s391_s4 = scalar_lea.vmem %s308_s3, 16  ;;  %s395_s5 = scalar_lea.vmem %s308_s3, 32 }
   0x8   :  { %v40_v18 = vrot.slane %v12_v15, %v39_v13  ;;  %v84_v19 = vrot.slane %v12_v15, %v83_v14  ;;  %p392_p0 = scmp.ne.s32.totalorder %s308_s3, %s391_s4  ;;  %p396_p1 = scmp.lt.s32.totalorder %s308_s3, %s308_s3 }
   0x9   :  { %p397_p2 = scmp.lt.s32.totalorder %s395_s5, %s391_s4 }
   0xa   :  { %383 = vset.pattern.permute.xlu1 %v417_v5  ;;  %34 = vperm.xlu0 %381, %v16_v4  }
   0xb   :  { %70 = vperm.xlu1 %383, %v14_v3   ;;  %p398_p3 = por %p397_p2, %p396_p1 }
   0xd   :  { %p399_p4 = pnand %p398_p3, %p392_p0 }
   0xe   :  { %385 = vset.pattern.permute.xlu0 %v417_v5 }
   0xf   :  { %384 = vset.pattern.permute.xlu1 %v416_v2  ;;  %66 = vperm.xlu0 %385, %v13_v0  }
  0x10   :  { %29 = vperm.xlu1 %384, %v15_v6  }
  0x13   :  { %74 = vperm.xlu0 %385, %v15_v6  }
  0x14   :  { %386 = vset.pattern.permute.xlu1 %v415_v1 }
  0x15   :  { %54 = vperm.xlu1 %386, %v15_v6  }
  0x17   :  { %389 = vset.pattern.permute.xlu0 %v418_v8 }
  0x18   :  { %106 = vperm.xlu0 %389, %v14_v3  }
  0x19   :  { %58 = vperm.xlu1 %386, %v16_v4  }
  0x1c   :  { %390 = vset.pattern.permute.xlu0 %v422_v56 }
  0x1d   :  { %387 = vset.pattern.permute.xlu1 %v417_v5  ;;  %296 = vperm.xlu0 %390, %v293_v55  }
  0x1e   :  { %78 = vperm.xlu1 %387, %v16_v4  }
  0x22   :  { %388 = vset.pattern.permute.xlu1 %v418_v8 }
  0x23   :  { %102 = vperm.xlu1 %388, %v13_v0  }
  0x27   :  { %110 = vperm.xlu1 %388, %v15_v6  }
  0x2b   :  { %114 = vperm.xlu1 %388, %v16_v4  }
  0x81   :  { %v47_v11 = vpop.permute.xlu1 %46  ;;  %v20_v12 = vpop.permute.xlu0 %19 }
  0x82   :  { %v41_v23 = vmul.f32 %v40_v18, %v20_v12 }
  0x84   :  { %v61_v27 = vadd.f32 %v47_v11, %v41_v23  ;;  %v219_v11 = vld [vmem:[%s490_s1 + $0x40] sm:$0xff] }
  0x85   :  { %v51_v16 = vpop.permute.xlu1 %50  ;;  %v25_v17 = vpop.permute.xlu0 %24 }
  0x86   :  { %v42_v20 = vmul.f32 %v40_v18, %v25_v17 }
  0x88   :  { %v62_v25 = vadd.f32 %v51_v16, %v42_v20 }
  0x89   :  { %v35_v21 = vpop.permute.xlu0 %34 }
  0x8a   :  { %v71_v22 = vpop.permute.xlu1 %70  ;;  %v44_v41 = vmul.f32 %v40_v18, %v35_v21 }
  0x8b   :  { %v86_v24 = vmul.f32 %v84_v19, %v71_v22 }
  0x8d   :  { %v90_v28 = vadd.f32 %v86_v24, %v62_v25 }
  0x8e   :  { %v67_v26 = vpop.permute.xlu0 %66 }
  0x8f   :  { %v85_v29 = vmul.f32 %v84_v19, %v67_v26  ;;  %v30_v30 = vpop.permute.xlu1 %29  ;;  %v94_v32 = vmax.f32 %v90_v28, 0.0 }
  0x90   :  { %v43_v37 = vmul.f32 %v40_v18, %v30_v30 }
  0x91   :  { %v89_v31 = vadd.f32 %v85_v29, %v61_v27 }
  0x92   :  { %v75_v36 = vpop.permute.xlu0 %74 }
  0x93   :  { %v93_v33 = vmax.f32 %v89_v31, 0.0  ;;  %v87_v40 = vmul.f32 %v84_v19, %v75_v36 }
  0x94   :  { %v55_v34 = vpop.permute.xlu1 %54 }
  0x95   :  { %v358_v35 = vpack.c.bf16 %v94_v32, %v93_v33  ;;  %v63_v39 = vadd.f32 %v55_v34, %v43_v37 }
  0x97   :  { %359 = vmatprep.subr.bf16.mxu0 %v358_v35  ;;  %v91_v43 = vadd.f32 %v87_v40, %v63_v39  ;;  %v107_v59 = vpop.permute.xlu0 %106 }
  0x98   :  { %v59_v38 = vpop.permute.xlu1 %58  ;;  %361 = vmatpush3.bf16.msra.mxu0 %v358_v35 }
  0x99   :  { %v64_v44 = vadd.f32 %v59_v38, %v44_v41  ;;  %v95_v47 = vmax.f32 %v91_v43, 0.0 }
  0x9c   :  { %v297_v12 = vpop.permute.xlu0 %296 }
  0x9d   :  { %v79_v42 = vpop.permute.xlu1 %78 }
  0x9e   :  { %v88_v45 = vmul.f32 %v84_v19, %v79_v42 }
  0xa0   :  { %v92_v46 = vadd.f32 %v88_v45, %v64_v44 }
  0xa2   :  { %v96_v48 = vmax.f32 %v92_v46, 0.0  ;;  %v103_v57 = vpop.permute.xlu1 %102 }
  0xa4   :  { %v362_v49 = vpack.c.bf16 %v96_v48, %v95_v47 }
  0xa6   :  { %363 = vmatprep.subr.bf16.mxu0 %v362_v49  ;;  %v111_v58 = vpop.permute.xlu1 %110 }
  0xa7   :  { %365 = vmatpush3.bf16.msra.mxu0 %v362_v49 }
  0xaa   :  { %342 = vmatmul.mubr.msk.f32.vlgmr.msra.gmra.mrb[0].mxu0 %vm117_vm0, %v98_v50  ;;  %v115_v1 = vpop.permute.xlu1 %114 }
  0xab   :  { %344 = vmatprep.mubr.msk.f32.mxu0 %vm117_vm0, %v99_v51 }
  0xae   :  { %345 = vmatmul.mubr.msk.f32.gmra.mrb[2].mxu0 %vm117_vm0, %v100_v52 }
 0x17d   :  { %v343_v60 = vpop.f32.mrb[0].mxu0 }
 0x17e   :  { %v202_v61 = vadd.f32 %v343_v60, %v107_v59  ;;  %v196_v62 = vpop.f32.mrb[1].mxu0 }
 0x17f   :  { %v197_v63 = vadd.f32 %v196_v62, %v103_v57 }
 0x180   :  { %v216_v0 = vmax.f32 %v202_v61, 0.0 }
 0x181   :  { %v215_v2 = vmax.f32 %v197_v63, 0.0  ;;  %v346_v3 = vpop.f32.mrb[2].mxu0 }
 0x182   :  { %v212_v4 = vadd.f32 %v346_v3, %v115_v1  ;;  %v206_v5 = vpop.f32.mrb[3].mxu0 }
 0x183   :  { %v207_v6 = vadd.f32 %v206_v5, %v111_v58  ;;  %v367_v7 = vpack.c.bf16 %v216_v0, %v215_v2 }
 0x184   :  { %v218_v8 = vmax.f32 %v212_v4, 0.0 }
 0x185   :  { %v217_v9 = vmax.f32 %v207_v6, 0.0  ;;  %368 = vmatpush3.bf16.msra.mxu1 %v367_v7 }
 0x186   :  { %369 = vmatprep.subr.bf16.mxu1 %v419_v53 }
 0x187   :  { %v370_v10 = vpack.c.bf16 %v218_v8, %v217_v9 }
 0x189   :  { %371 = vmatpush3.bf16.msra.mxu1 %v370_v10 }
 0x18c   :  { %356 = vmatmul.mubr.msk.f32.vlgmr.msra.gmra.mrb[0].mxu1 %vm117_vm0, %v219_v11 }
 0x25f   :  { %v289_v13 = vpop.f32.mrb[0].mxu1 }
 0x260   :  { %v299_v14 = vadd.f32 %v297_v12, %v289_v13  ;;  %v357_v15 = vpop.f32.mrb[1].mxu1 }
 0x262   :  { %300 = vst [vmem:[#allocation2] sm:$0x1] %v299_v14 }
 0x263   :  { %402 = shalt.err (!%p399_p4)
}
 0x264   :  { %s403_s7 = scalar_lea.hbm %s491_s2, 16 }
 0x265   :  { %p404_p5 = scmp.ne.s32.totalorder %s491_s2, %s403_s7  ;;  %p407_p6 = scmp.lt.u32.totalorder %s403_s7, %s491_s2 }
 0x267   :  { %p409_p7 = pnand %p407_p6, %p404_p5 }
 0x269   :  { %412 = shalt.err (!%p409_p7)
}
 0x26a   :  { %310 = dma.vmem_to_hbm [thread:$0]  %s308_s3, 16, %s491_s2, [#allocation3]  }
 0x26b   :  { %413 = dma.done.wait [#allocation3], 16  }
 0x26c   :  { %414 = vsyncadd [#allocation3], 4294967280 }
 0x26d   :  { %314 = vsyncpa [#allocation3], 1 }

</bundles_post_ra>
